<compile_context>
chip_gen: v6e
topology: v6e:2x2x1
jax: 0.10.0
libtpu: 0.0.40
codegen_flags: <defaults>
</compile_context>

<pallas_src>
import math

import jax
import jax.numpy as jnp
from jax.experimental import pallas as pl
from jax.experimental.pallas import tpu as pltpu


def siren_kernel(x_ref, w_ref, b_ref, o_ref):
    # x_ref: (TB, d_in)   streamed batch tile
    # w_ref: (d_in, d_hid) resident, pre-transposed, already scaled by w0
    # b_ref: (1, d_hid)    resident, already scaled by w0
    acc = jnp.dot(x_ref[...], w_ref[...], preferred_element_type=jnp.float32)
    acc = acc + b_ref[...].astype(jnp.float32)
    o_ref[...] = jnp.sin(acc).astype(o_ref.dtype)


def _choose_batch_tile(B, d_in, d_hid, itemsize, vmem_budget=24 << 20):
    """Pick a batch tile TB so resident params + double-buffered x/out tiles
    stay under `vmem_budget` (conservative for all TPU generations)."""
    fixed = (d_in * d_hid + d_hid) * itemsize          # resident weight + bias
    per_row = 2 * (d_in + d_hid) * itemsize            # double-buffered x + out rows
    tb = max(8, (vmem_budget - fixed) // per_row)
    tb = int(min(tb, 4096))                            # >=512 rows already ~85% of HBM roofline
    if tb >= B:
        return B
    return max(8, (tb // 8) * 8)                       # satisfy (8, 128) sublane constraint


def siren_layer(x, weight, bias=None, *, w0=1.0, block_b=None):
    """Pallas forward pass of SirenLayer.

    x:      (B, d_in)       float32
    weight: (d_hid, d_in)   float32  (PyTorch nn.Linear convention)
    bias:   (d_hid,) or None
    returns (B, d_hid)      x.dtype
    """
    B, d_in = x.shape
    d_hid = weight.shape[0]
    dtype = x.dtype
    itemsize = jnp.dtype(dtype).itemsize

    # One-time parameter transform outside the kernel:
    #   fold w0 into W and b, pre-transpose W to (d_in, d_hid).
    w_t = (jnp.float32(w0) * weight.astype(jnp.float32)).T.astype(dtype)
    if bias is None:
        b2d = jnp.zeros((1, d_hid), dtype)
    else:
        b2d = (jnp.float32(w0) * bias.astype(jnp.float32)).reshape(1, d_hid).astype(dtype)

    if block_b is None:
        tb = _choose_batch_tile(B, d_in, d_hid, itemsize)
    else:
        tb = min(int(block_b), B)
    if tb != B:
        tb = max(8, (tb // 8) * 8)
    grid = (pl.cdiv(B, tb),)

    return pl.pallas_call(
        siren_kernel,
        out_shape=jax.ShapeDtypeStruct((B, d_hid), dtype),
        grid_spec=pltpu.PrefetchScalarGridSpec(
            num_scalar_prefetch=0,
            grid=grid,
            in_specs=[
                pl.BlockSpec((tb, d_in), lambda i: (i, 0)),     # streamed x tile
                pl.BlockSpec((d_in, d_hid), lambda i: (0, 0)),  # resident weight
                pl.BlockSpec((1, d_hid), lambda i: (0, 0)),     # resident bias
            ],
            out_specs=pl.BlockSpec((tb, d_hid), lambda i: (i, 0)),
        ),
        compiler_params=pltpu.CompilerParams(
            dimension_semantics=("parallel",),   # independent batch tiles -> megacore on v7x
            vmem_limit_bytes=32 << 20,           # explicit, safe on v5e/v6e/v7x
        ),
    )(x, w_t, b2d)


def reference(x, weight, bias, w0):
    return jnp.sin(w0 * (x @ weight.T + bias))


if __name__ == "__main__":
    # Module config (SirenLayer(input_dim, hidden_dim, w0, is_first))
    input_dim = 32
    hidden_dim = 32
    batch = 64
    w0 = 30.0
    is_first = False
    c = 6

    # Deterministic parameter init, mirroring reset_parameters():
    # w_std = 1/dim if is_first else sqrt(c/dim)/w0 ; uniform(-w_std, w_std)
    w_std = (1.0 / input_dim) if is_first else math.sqrt(c / input_dim) / w0
    key = jax.random.PRNGKey(0)
    kx, kw, kb = jax.random.split(key, 3)
    weight = jax.random.uniform(
        kw, (hidden_dim, input_dim), jnp.float32, -w_std, w_std)
    bias = jax.random.uniform(
        kb, (hidden_dim,), jnp.float32, -w_std, w_std)
    x = jax.random.normal(kx, (batch, input_dim), jnp.float32)

    ref = reference(x, weight, bias, w0)

    # 1) Auto tile size (single tile for this tiny shape).
    out_auto = jax.block_until_ready(siren_layer(x, weight, bias, w0=w0))
    assert out_auto.shape == (batch, hidden_dim)
    assert jnp.allclose(out_auto, ref, atol=1e-5, rtol=1e-5), "mismatch (auto tile)"

    # 2) Forced small tile to exercise the multi-step batch-tiled grid path.
    out_tiled = jax.block_until_ready(siren_layer(x, weight, bias, w0=w0, block_b=16))
    assert jnp.allclose(out_tiled, ref, atol=1e-5, rtol=1e-5), "mismatch (tiled grid)"

    print("KERNEL_OK")
</pallas_src>

<mosaic_0001>
module attributes {stable_mosaic.version = 11 : i64} {
  func.func @siren_kernel(%arg0: i32, %arg1: memref<64x32xf32, #tpu.memory_space<vmem>>, %arg2: memref<32x32xf32, #tpu.memory_space<vmem>>, %arg3: memref<1x32xf32, #tpu.memory_space<vmem>>, %arg4: memref<64x32xf32, #tpu.memory_space<vmem>>) attributes {dimension_semantics = [#tpu.dimension_semantics<parallel>], iteration_bounds = array<i64: 1>, scalar_prefetch = 0 : i64, scratch_operands = 0 : i64, tpu.core_type = #tpu.core_type<tc>, window_params = [{transform_indices = @transform_0, window_bounds = array<i64: 64, 32>}, {pipeline_mode = #tpu.pipeline_mode<synchronous>, transform_indices = @transform_1, window_bounds = array<i64: 32, 32>}, {pipeline_mode = #tpu.pipeline_mode<synchronous>, transform_indices = @transform_2, window_bounds = array<i64: 1, 32>}, {transform_indices = @transform_3, window_bounds = array<i64: 64, 32>}]} {
    %c0 = arith.constant 0 : index
    %c0_0 = arith.constant 0 : index
    %0 = vector.load %arg1[%c0, %c0_0] : memref<64x32xf32, #tpu.memory_space<vmem>>, vector<64x32xf32>
    %c0_1 = arith.constant 0 : index
    %c0_2 = arith.constant 0 : index
    %1 = vector.load %arg2[%c0_1, %c0_2] : memref<32x32xf32, #tpu.memory_space<vmem>>, vector<32x32xf32>
    %cst = arith.constant dense<0.000000e+00> : vector<64x32xf32>
    %2 = tpu.matmul %0, %1, %cst {dimension_numbers = #tpu.dot_dimension_numbers<[1], [0], [0], [1], [0, 0, 1, 1], [], []>} : vector<64x32xf32>, vector<32x32xf32>, vector<64x32xf32> -> vector<64x32xf32>
    %c0_3 = arith.constant 0 : index
    %c0_4 = arith.constant 0 : index
    %3 = vector.load %arg3[%c0_3, %c0_4] : memref<1x32xf32, #tpu.memory_space<vmem>>, vector<1x32xf32>
    %4 = vector.broadcast %3 : vector<1x32xf32> to vector<64x32xf32>
    %5 = arith.addf %2, %4 : vector<64x32xf32>
    %6 = math.sin %5 : vector<64x32xf32>
    %c0_5 = arith.constant 0 : index
    %c0_6 = arith.constant 0 : index
    %7 = vector.load %arg4[%c0_5, %c0_6] : memref<64x32xf32, #tpu.memory_space<vmem>>, vector<64x32xf32>
    tpu.vector_store %arg4[%c0_5, %c0_6], %6 {strides = array<i32>} : memref<64x32xf32, #tpu.memory_space<vmem>>, vector<64x32xf32>,
    return
  }
  func.func @transform_0(%arg0: i32) -> (i32, i32) {
    %c0_i32 = arith.constant 0 : i32
    %c0_i32_0 = arith.constant 0 : i32
    return %arg0, %c0_i32 : i32, i32
  }
  func.func @transform_1(%arg0: i32) -> (i32, i32) {
    %c0_i32 = arith.constant 0 : i32
    %c0_i32_0 = arith.constant 0 : i32
    %c0_i32_1 = arith.constant 0 : i32
    return %c0_i32, %c0_i32_0 : i32, i32
  }
  func.func @transform_2(%arg0: i32) -> (i32, i32) {
    %c0_i32 = arith.constant 0 : i32
    %c0_i32_0 = arith.constant 0 : i32
    %c0_i32_1 = arith.constant 0 : i32
    return %c0_i32, %c0_i32_0 : i32, i32
  }
  func.func @transform_3(%arg0: i32) -> (i32, i32) {
    %c0_i32 = arith.constant 0 : i32
    %c0_i32_0 = arith.constant 0 : i32
    return %arg0, %c0_i32 : i32, i32
  }
}

</mosaic_0001>

<bundles_post_ra>
// kernel: tpu_custom_call.1
= control target key start
LH: loop header
LB: loop body
LE: loop exit
PB: predicated region body
PF: predicated region fallthrough
CT: control target
= control target key end

     0   :  { %vm33_vm0 = vcmask 261120   ;;  %v1159_v48 = vmov 683565275   ;;  %v1160_v52 = vmov 2475754826   ;;  %s1813_s1 = inlined_call_operand.vmem [shape: f32[32,32], index: 1, kind: input, shape index: {}]   ;;  %s1814_s0 = inlined_call_operand.vmem [shape: f32[64,32], index: 0, kind: input, shape index: {}]   ;;  %s1815_s2 = inlined_call_operand.vmem [shape: f32[1,32], index: 2, kind: input, shape index: {}]   ;;  %s1816_s3 = inlined_call_operand.vmem [shape: f32[64,32], index: 3, kind: output, shape index: {}]  }
   0x1   :  { %v25_v0 = vld [vmem:[%s1813_s1 + $0x18] sm:$0xff]  ;;  %v24_v1 = vld [vmem:[%s1813_s1 + $0x10] sm:$0xff]  ;;  %v23_v2 = vld [vmem:[%s1813_s1 + $0x8] sm:$0xff]  ;;  %v1161_v54 = vmov 2131351028  }
   0x2   :  { %1060 = vmatprep.subr.mxu0 %v25_v0  ;;  %1080 = vmatprep.subr.mxu1 %v25_v0  ;;  %v22_v3 = vld [vmem:[%s1813_s1] sm:$0xff]  ;;  %v15_v6 = vld [vmem:[%s1814_s0 + $0x8] sm:$0xff]  ;;  %v16_v8 = vld [vmem:[%s1814_s0 + $0x10] sm:$0xff]  ;;  %v1162_v56 = vmov 2102212464  }
   0x3   :  { %1061 = vmatpush3.msra.mxu0 %v25_v0  ;;  %1084 = vmatpush3.msra.mxu1 %v25_v0  ;;  %v14_v4 = vld [vmem:[%s1814_s0] sm:$0xff]  ;;  %v19_v7 = vld [vmem:[%s1814_s0 + $0x28] sm:$0xff]  ;;  %v20_v9 = vld [vmem:[%s1814_s0 + $0x30] sm:$0xff]  ;;  %v1163_v58 = vmov 920167782  }
   0x4   :  { %1062 = vmatprep.subr.mxu0 %v24_v1  ;;  %1081 = vmatprep.subr.mxu1 %v24_v1  ;;  %v18_v5 = vld [vmem:[%s1814_s0 + $0x20] sm:$0xff]  ;;  %v17_v10 = vld [vmem:[%s1814_s0 + $0x18] sm:$0xff] }
   0x5   :  { %1063 = vmatpush3.msra.mxu0 %v24_v1  ;;  %1085 = vmatpush3.msra.mxu1 %v24_v1  ;;  %v21_v11 = vld [vmem:[%s1814_s0 + $0x38] sm:$0xff]  ;;  %v1232_v12 = vld [vmem:[%s1815_s2] ss:$0 sm:$0xff]  ;;  %v1164_v1 = vmov 1326507024  }
   0x6   :  { %1064 = vmatprep.subr.mxu0 %v23_v2  ;;  %1082 = vmatprep.subr.mxu1 %v23_v2 }
   0x7   :  { %1065 = vmatpush3.msra.mxu0 %v23_v2  ;;  %1086 = vmatpush3.msra.mxu1 %v23_v2 }
   0x8   :  { %1066 = vmatprep.subr.mxu0 %v22_v3  ;;  %1083 = vmatprep.subr.mxu1 %v22_v3 }
   0x9   :  { %1067 = vmatpush3.msra.mxu0 %v22_v3  ;;  %1087 = vmatpush3.msra.mxu1 %v22_v3 }
   0xa   :  { %1068 = vmatprep.mubr.msk.f32.mxu0 %vm33_vm0, %v14_v4  ;;  %1074 = vmatprep.mubr.msk.f32.mxu1 %vm33_vm0, %v18_v5 }
   0xb   :  { %1069 = vmatmul.mubr.msk.f32.vlgmr.msra.gmra.mxu0 %vm33_vm0, %v15_v6  ;;  %1075 = vmatmul.mubr.msk.f32.vlgmr.msra.gmra.mxu1 %vm33_vm0, %v19_v7 }
   0xc   :  { %1071 = vmatprep.mubr.msk.f32.mxu0 %vm33_vm0, %v16_v8  ;;  %1077 = vmatprep.mubr.msk.f32.mxu1 %vm33_vm0, %v20_v9 }
   0xf   :  { %1072 = vmatmul.mubr.msk.f32.gmra.mxu0 %vm33_vm0, %v17_v10  ;;  %1078 = vmatmul.mubr.msk.f32.gmra.mxu1 %vm33_vm0, %v21_v11 }
  0xcb   :  { %v1070_v13 = vpop.f32.mrf.mxu0  ;;  %v1076_v14 = vpop.f32.mrf.mxu1 }
  0xcc   :  { %v1235_v15 = vadd.f32 %v1070_v13, %v1232_v12  ;;  %v1238_v16 = vadd.f32 %v1076_v14, %v1232_v12 }
  0xcd   :  { %v124_v17 = vpop.f32.mrf.mxu0  ;;  %v144_v36 = vpop.f32.mrf.mxu1 }
  0xce   :  { %v267_v18 = vand.u32 2147483647, %v1235_v15  ;;  %v270_v19 = vand.u32 2139095040, %v1235_v15  ;;  %v683_v20 = vand.u32 2147483647, %v1238_v16  ;;  %v686_v21 = vand.u32 2139095040, %v1238_v16 }
  0xcf   :  { %v1247_v24 = vadd.f32 %v1232_v12, %v124_v17  ;;  %v1254_v42 = vadd.f32 %v1232_v12, %v144_v36  ;;  %vm269_vm14 = vcmp.lt.s32.totalorder %v1235_v15, 0 }
  0xd0   :  { %v271_v22 = vshrl.u32 %v270_v19, 23  ;;  %v274_v23 = vand.u32 8388607, %v267_v18  ;;  %v687_v25 = vshrl.u32 %v686_v21, 23  ;;  %v690_v26 = vand.u32 8388607, %v683_v20 }
  0xd1   :  { %v166_v29 = vand.u32 2139095040, %v1247_v24  ;;  %v163_v34 = vand.u32 2147483647, %v1247_v24  ;;  %vm1359_vm15 = vcmp.le.f32.partialorder %v267_v18, 0.7853982 }
  0xd2   :  { %v1020_v27 = vadd.s32 4294967169, %v271_v22  ;;  %v1036_v28 = vadd.s32 4294967169, %v687_v25  ;;  %v275_v30 = vor.u32 8388608, %v274_v23  ;;  %v691_v32 = vor.u32 8388608, %v690_v26 }
  0xd3   :  { %v167_v35 = vshrl.u32 %v166_v29, 23  ;;  %v1264_v46 = vand.u32 8388607, %v163_v34 }
  0xd4   :  { %v277_v31 = vadd.s32 1, %v1020_v27  ;;  %v693_v33 = vadd.s32 1, %v1036_v28  ;;  %v1256_v43 = vshll.u32 %v275_v30, 8  ;;  %v1260_v45 = vshll.u32 %v691_v32, 8 }
  0xd5   :  { %v1016_v38 = vadd.s32 4294967169, %v167_v35 }
  0xd6   :  { %vm278_vm1 = vcmp.gt.s32.totalorder %v277_v31, 0  ;;  %vm694_vm2 = vcmp.gt.s32.totalorder %v693_v33, 0 }
  0xd7   :  { %v279_v37 = vsel %vm278_vm1, %v277_v31, 0  ;;  %v695_v41 = vsel %vm694_vm2, %v693_v33, 0  ;;  %v1267_v51 = vadd.s32 1, %v1016_v38 }
  0xd8   :  { %v280_v39 = vshrl.u32 %v279_v37, 5  ;;  %v281_v40 = vand.u32 31, %v279_v37  ;;  %v1258_v44 = vshrl.u32 %v695_v41, 5  ;;  %v697_v50 = vand.u32 31, %v695_v41 }
  0xd9   :  { %vm174_vm12 = vcmp.gt.s32.totalorder %v1267_v51, 0 }
  0xda   :  { %v282_v47 = vsub.s32 32, %v281_v40  ;;  %v284_v49 = vshll.u32 %v1159_v48, %v281_v40  ;;  %v287_v53 = vshll.u32 %v1160_v52, %v281_v40  ;;  %v290_v55 = vshll.u32 %v1161_v54, %v281_v40 }
  0xdb   :  { %v293_v57 = vshll.u32 %v1162_v56, %v281_v40  ;;  %v296_v59 = vshll.u32 %v1163_v58, %v281_v40  ;;  %vm299_vm3 = vcmp.lt.s32.totalorder %v280_v39, 1  ;;  %vm300_vm4 = vcmp.lt.s32.totalorder %v280_v39, 2 }
  0xdc   :  { %v285_v60 = vshrl.u32 %v1160_v52, %v282_v47  ;;  %v288_v61 = vshrl.u32 %v1161_v54, %v282_v47  ;;  %v291_v62 = vshrl.u32 %v1162_v56, %v282_v47  ;;  %v283_v63 = vshrl.u32 %v1159_v48, %v282_v47 }
  0xdd   :  { %v294_v0 = vshrl.u32 %v1163_v58, %v282_v47  ;;  %v297_v2 = vshrl.u32 %v1164_v1, %v282_v47  ;;  %v698_v6 = vsub.s32 32, %v697_v50  ;;  %vm301_vm5 = vcmp.lt.s32.totalorder %v280_v39, 3 }
  0xde   :  { %v286_v3 = vor.u32 %v285_v60, %v284_v49  ;;  %v289_v4 = vor.u32 %v288_v61, %v287_v53  ;;  %v292_v5 = vor.u32 %v291_v62, %v290_v55  ;;  %vm302_vm6 = vcmp.lt.s32.totalorder %v280_v39, 4 }
  0xdf   :  { %v295_v7 = vor.u32 %v294_v0, %v293_v57  ;;  %v298_v8 = vor.u32 %v297_v2, %v296_v59  ;;  %v700_v21 = vshll.u32 %v1159_v48, %v697_v50  ;;  %v701_v25 = vshrl.u32 %v1160_v52, %v698_v6 }
  0xe0   :  { %v303_v9 = vsel %vm299_vm3, %v283_v63, %v286_v3  ;;  %v304_v10 = vsel %vm302_vm6, %v292_v5, 2102212464  ;;  %v307_v11 = vsel %vm299_vm3, %v286_v3, %v289_v4  ;;  %v311_v13 = vsel %vm299_vm3, %v289_v4, %v292_v5 }
  0xe1   :  { %v305_v14 = vsel %vm301_vm5, %v289_v4, %v304_v10  ;;  %v308_v17 = vsel %vm302_vm6, %v295_v7, 920167782  ;;  %v312_v19 = vsel %vm302_vm6, %v298_v8, 1326507024  ;;  %v703_v26 = vshll.u32 %v1160_v52, %v697_v50 }
  0xe2   :  { %v309_v22 = vsel %vm301_vm5, %v292_v5, %v308_v17  ;;  %v313_v23 = vsel %vm301_vm5, %v295_v7, %v312_v19  ;;  %v306_v27 = vsel %vm300_vm4, %v303_v9, %v305_v14  ;;  %v704_v30 = vshrl.u32 %v1161_v54, %v698_v6 }
  0xe3   :  { %v310_v28 = vsel %vm300_vm4, %v307_v11, %v309_v22  ;;  %v314_v29 = vsel %vm300_vm4, %v311_v13, %v313_v23  ;;  %v702_v36 = vor.u32 %v701_v25, %v700_v21  ;;  %v706_v38 = vshll.u32 %v1161_v54, %v697_v50 }
  0xe4   :  { %v1290_v31 = vmul.u32.u64.low %v1256_v43, %v314_v29  ;;  %v1291_v32 = vmul.u32.u64.high %v1256_v43, %v314_v29, %v1290_v31  ;;  %v1294_v33 = vmul.u32.u64.low %v1256_v43, %v310_v28  ;;  %v1295_v35 = vmul.u32.u64.high %v1256_v43, %v310_v28, %v1294_v33 }
  0xe5   :  { %v705_v37 = vor.u32 %v704_v30, %v703_v26  ;;  %v707_v40 = vshrl.u32 %v1162_v56, %v698_v6  ;;  %v699_v41 = vshrl.u32 %v1159_v48, %v698_v6  ;;  %v709_v39 = vshll.u32 %v1162_v56, %v697_v50 }
  0xe6   :  { %v710_v47 = vshrl.u32 %v1163_v58, %v698_v6  ;;  %v713_v49 = vshrl.u32 %v1164_v1, %v698_v6  ;;  %v322_v53 = vmul.u32 %v1256_v43, %v306_v27  ;;  %v712_v57 = vshll.u32 %v1163_v58, %v697_v50 }
  0xe7   :  { %v708_v55 = vor.u32 %v707_v40, %v706_v38  ;;  %vm715_vm7 = vcmp.lt.s32.totalorder %v1258_v44, 1  ;;  %vm324_vm8 = vc.u32 %v1291_v32, %v1294_v33  ;;  %v325_v59 = vadd.s32 1, %v1295_v35 }
  0xe8   :  { %v711_v60 = vor.u32 %v710_v47, %v709_v39  ;;  %vm716_vm9 = vcmp.lt.s32.totalorder %v1258_v44, 2  ;;  %v714_v61 = vor.u32 %v713_v49, %v712_v57  ;;  %vm717_vm10 = vcmp.lt.s32.totalorder %v1258_v44, 3 }
  0xe9   :  { %vm718_vm11 = vcmp.lt.s32.totalorder %v1258_v44, 4  ;;  %v723_v62 = vsel %vm715_vm7, %v702_v36, %v705_v37  ;;  %v326_v43 = vsel %vm324_vm8, %v325_v59, %v1295_v35  ;;  %v727_v50 = vsel %vm715_vm7, %v705_v37, %v708_v55 }
  0xea   :  { %v720_v63 = vsel %vm718_vm11, %v708_v55, 2102212464  ;;  %v724_v0 = vsel %vm718_vm11, %v711_v60, 920167782  ;;  %v327_v2 = vadd.s32 %v326_v43, %v322_v53  ;;  %v719_v3 = vsel %vm715_vm7, %v699_v41, %v702_v36 }
  0xeb   :  { %v725_v4 = vsel %vm717_vm10, %v708_v55, %v724_v0  ;;  %v728_v5 = vsel %vm718_vm11, %v714_v61, 1326507024  ;;  %v721_v6 = vsel %vm717_vm10, %v705_v37, %v720_v63  ;;  %v175_v19 = vsel %vm174_vm12, %v1267_v51, 0 }
  0xec   :  { %v726_v7 = vsel %vm716_vm9, %v723_v62, %v725_v4  ;;  %v729_v8 = vsel %vm717_vm10, %v711_v60, %v728_v5  ;;  %v328_v9 = vadd.s32 536870912, %v327_v2  ;;  %v722_v22 = vsel %vm716_vm9, %v719_v3, %v721_v6 }
  0xed   :  { %v730_v10 = vsel %vm716_vm9, %v727_v50, %v729_v8  ;;  %v1318_v11 = vmul.u32.u64.low %v1260_v45, %v726_v7  ;;  %v1319_v13 = vmul.u32.u64.high %v1260_v45, %v726_v7, %v1318_v11  ;;  %v177_v23 = vand.u32 31, %v175_v19 }
  0xee   :  { %v1323_v14 = vmul.u32.u64.low %v1260_v45, %v730_v10  ;;  %v1324_v17 = vmul.u32.u64.high %v1260_v45, %v730_v10, %v1323_v14  ;;  %v329_v21 = vshrl.u32 %v328_v9, 30  ;;  %v582_v25 = vand.u32 2139095040, %v1254_v42 }
  0xef   :  { %v741_v27 = vadd.s32 1, %v1319_v13  ;;  %v171_v28 = vor.u32 8388608, %v1264_v46  ;;  %v738_v29 = vmul.u32 %v1260_v45, %v722_v22  ;;  %v178_v30 = vsub.s32 32, %v177_v23 }
  0xf0   :  { %v330_v26 = vshll.u32 %v329_v21, 30  ;;  %vm740_vm13 = vc.u32 %v1324_v17, %v1318_v11  ;;  %v583_v44 = vshrl.u32 %v582_v25, 23  ;;  %v323_v36 = vadd.s32 %v1294_v33, %v1291_v32 }
  0xf1   :  { %v742_v51 = vsel %vm740_vm13, %v741_v27, %v1319_v13  ;;  %v1341_v38 = vshll.u32 %v171_v28, 8  ;;  %v579_v45 = vand.u32 2147483647, %v1254_v42  ;;  %v1344_v40 = vshrl.u32 %v175_v19, 5 }
  0xf2   :  { %v1335_v31 = vsub.s32 %v327_v2, %v330_v26  ;;  %v743_v35 = vadd.s32 %v742_v51, %v738_v29  ;;  %v181_v41 = vshrl.u32 %v1160_v52, %v178_v30  ;;  %v184_v39 = vshrl.u32 %v1161_v54, %v178_v30 }
  0xf3   :  { %v187_v49 = vshrl.u32 %v1162_v56, %v178_v30  ;;  %v190_v53 = vshrl.u32 %v1163_v58, %v178_v30  ;;  %v1351_v32 = vadd.s32 4294967169, %v583_v44  ;;  %v353_v33 = vsub.s32 4, %v329_v21 }
  0xf4   :  { %v333_v37 = vsub.s32 0, %v1335_v31  ;;  %v744_v46 = vadd.s32 536870912, %v743_v35  ;;  %v180_v57 = vshll.u32 %v1159_v48, %v177_v23  ;;  %v183_v59 = vshll.u32 %v1160_v52, %v177_v23 }
  0xf5   :  { %v186_v62 = vshll.u32 %v1161_v54, %v177_v23  ;;  %v189_v43 = vshll.u32 %v1162_v56, %v177_v23  ;;  %v193_v63 = vshrl.u32 %v1164_v1, %v178_v30  ;;  %v1369_v3 = vand.u32 8388607, %v579_v45 }
  0xf6   :  { %v1021_v47 = vmin.u32 %v333_v37, %v1335_v31  ;;  %v1353_v55 = vshrl.u32 %v744_v46, 30  ;;  %v182_v50 = vor.u32 %v181_v41, %v180_v57  ;;  %v185_v2 = vor.u32 %v184_v39, %v183_v59 }
  0xf7   :  { %v188_v18 = vor.u32 %v187_v49, %v186_v62  ;;  %v191_v5 = vor.u32 %v190_v53, %v189_v43  ;;  %v192_v6 = vshll.u32 %v1163_v58, %v177_v23  ;;  %v354_v7 = vsel %vm269_vm14, %v353_v33, %v329_v21 }
  0xf8   :  { %v335_v61 = vclz %v1021_v47  ;;  %v746_v0 = vshll.u32 %v1353_v55, 30  ;;  %v179_v9 = vshrl.u32 %v1159_v48, %v178_v30  ;;  %vm195_vm1 = vcmp.lt.s32.totalorder %v1344_v40, 1 }
  0xf9   :  { %v194_v10 = vor.u32 %v193_v63, %v192_v6  ;;  %vm196_vm3 = vcmp.lt.s32.totalorder %v1344_v40, 2  ;;  %vm197_vm4 = vcmp.lt.s32.totalorder %v1344_v40, 3  ;;  %vm685_vm5 = vcmp.lt.s32.totalorder %v1238_v16, 0 }
  0xfa   :  { %v1022_v4 = vadd.s32 4294967294, %v335_v61  ;;  %v1374_v8 = vsub.s32 %v743_v35, %v746_v0  ;;  %vm198_vm6 = vcmp.lt.s32.totalorder %v1344_v40, 4  ;;  %v203_v19 = vsel %vm195_vm1, %v182_v50, %v185_v2 }
  0xfb   :  { %v200_v23 = vsel %vm198_vm6, %v188_v18, 2102212464  ;;  %v204_v25 = vsel %vm198_vm6, %v191_v5, 920167782  ;;  %v207_v29 = vsel %vm195_vm1, %v185_v2, %v188_v18  ;;  %v208_v35 = vsel %vm198_vm6, %v194_v10, 1326507024 }
  0xfc   :  { %vm1023_vm2 = vcmp.lt.s32.totalorder %v1022_v4, 0  ;;  %v749_v14 = vsub.s32 0, %v1374_v8  ;;  %v205_v28 = vsel %vm197_vm4, %v188_v18, %v204_v25  ;;  %v356_v37 = vsel %vm1359_vm15, 0, %v354_v7 }
  0xfd   :  { %v338_v13 = vsel %vm1023_vm2, 0, %v1022_v4  ;;  %v206_v44 = vsel %vm196_vm3, %v203_v19, %v205_v28  ;;  %vm1397_vm7 = vcmp.le.f32.partialorder %v683_v20, 0.7853982  ;;  %v199_v41 = vsel %vm195_vm1, %v179_v9, %v182_v50 }
  0xfe   :  { %v339_v21 = vsub.s32 32, %v338_v13  ;;  %v343_v22 = vsub.s32 4294967266, %v338_v13  ;;  %v340_v26 = vshll.u32 %v1335_v31, %v338_v13  ;;  %v1037_v27 = vmin.u32 %v749_v14, %v1374_v8 }
  0xff   :  { %v769_v49 = vsub.s32 4, %v1353_v55  ;;  %v209_v53 = vsel %vm197_vm4, %v191_v5, %v208_v35  ;;  %v1411_v57 = vmul.u32.u64.low %v1341_v38, %v206_v44  ;;  %v1412_v59 = vmul.u32.u64.high %v1341_v38, %v206_v44, %v1411_v57 }
 0x100   :  { %v341_v30 = vshrl.u32 %v323_v36, %v339_v21  ;;  %v344_v51 = vadd.s32 127, %v343_v22  ;;  %v751_v46 = vclz %v1037_v27  ;;  %v201_v36 = vsel %vm197_vm4, %v185_v2, %v200_v23  ;;  %v1073_v21 = vpop.f32.mrf.mxu0 }
 0x101   :  { %v210_v20 = vsel %vm196_vm3, %v207_v29, %v209_v53  ;;  %v202_v62 = vsel %vm196_vm3, %v199_v41, %v201_v36  ;;  %v360_v0 = vadd.s32 3, %v356_v37  ;;  %v739_v50 = vadd.s32 %v1318_v11, %v1324_v17 }
 0x102   :  { %v342_v39 = vor.u32 %v341_v30, %v340_v26  ;;  %v345_v47 = vshll.u32 %v344_v51, 23  ;;  %v1038_v33 = vadd.s32 4294967294, %v751_v46  ;;  %v589_v2 = vadd.s32 1, %v1351_v32 }
 0x103   :  { %v1418_v43 = vmul.u32.u64.low %v1341_v38, %v210_v20  ;;  %v1419_v63 = vmul.u32.u64.high %v1341_v38, %v210_v20, %v1418_v43  ;;  %v770_v6 = vsel %vm685_vm5, %v769_v49, %v1353_v55  ;;  %v218_v9 = vmul.u32 %v1341_v38, %v202_v62 }
 0x104   :  { %v346_v61 = vor.u32 4788187, %v345_v47  ;;  %vm1039_vm8 = vcmp.lt.s32.totalorder %v1038_v33, 0  ;;  %v349_v18 = vcvt.s32.f32 %v342_v39  ;;  %v221_v10 = vadd.s32 1, %v1412_v59 }
 0x105   :  { %v754_v5 = vsel %vm1039_vm8, 0, %v1038_v33  ;;  %vm220_vm9 = vc.u32 %v1419_v63, %v1411_v57  ;;  %vm590_vm10 = vcmp.gt.s32.totalorder %v589_v2, 0  ;;  %v772_v22 = vsel %vm1397_vm7, 0, %v770_v6 }
 0x106   :  { %v347_v4 = vand.u32 2147483647, %v346_v61  ;;  %v755_v40 = vsub.s32 32, %v754_v5  ;;  %v759_v7 = vsub.s32 4294967266, %v754_v5  ;;  %v756_v14 = vshll.u32 %v1374_v8, %v754_v5 }
 0x107   :  { %v222_v32 = vsel %vm220_vm9, %v221_v10, %v1412_v59  ;;  %v591_v19 = vsel %vm590_vm10, %v589_v2, 0  ;;  %v1438_v29 = vadd.f32 %v1073_v21, %v1232_v12  ;;  %v1443_v51 = vand.u32 3, %v360_v0 }
 0x108   :  { %v350_v13 = vmul.f32 %v349_v18, %v347_v4  ;;  %v757_v11 = vshrl.u32 %v739_v50, %v755_v40  ;;  %v760_v17 = vadd.s32 127, %v759_v7  ;;  %v223_v38 = vadd.s32 %v222_v32, %v218_v9 }
 0x109   :  { %v593_v23 = vand.u32 31, %v591_v19  ;;  %v1445_v35 = vadd.s32 3, %v772_v22  ;;  %v587_v46 = vor.u32 8388608, %v1369_v3  ;;  %vm165_vm11 = vcmp.lt.s32.totalorder %v1247_v24, 0 }
 0x10a   :  { %v351_v55 = vxor.u32 2147483648, %v350_v13  ;;  %v758_v25 = vor.u32 %v757_v11, %v756_v14  ;;  %v761_v26 = vshll.u32 %v760_v17, 23  ;;  %v224_v27 = vadd.s32 536870912, %v223_v38 }
 0x10b   :  { %v594_v28 = vsub.s32 32, %v593_v23  ;;  %v1451_v49 = vshrl.u32 %v591_v19, 5  ;;  %v596_v53 = vshll.u32 %v1159_v48, %v593_v23  ;;  %v599_v59 = vshll.u32 %v1160_v52, %v593_v23 }
 0x10c   :  { %v352_v8 = vsel %vm269_vm14, %v351_v55, %v350_v13  ;;  %v762_v44 = vor.u32 4788187, %v761_v26  ;;  %v225_v37 = vshrl.u32 %v224_v27, 30  ;;  %v765_v39 = vcvt.s32.f32 %v758_v25 }
 0x10d   :  { %v355_v30 = vsel %vm1359_vm15, %v1235_v15, %v352_v8  ;;  %v597_v41 = vshrl.u32 %v1160_v52, %v594_v28  ;;  %v600_v47 = vshrl.u32 %v1161_v54, %v594_v28  ;;  %v603_v33 = vshrl.u32 %v1162_v56, %v594_v28 }
 0x10e   :  { %1126 = vcosq.f32 %v355_v30  ;;  %v763_v36 = vand.u32 2147483647, %v762_v44  ;;  %v226_v60 = vshll.u32 %v225_v37, 30  ;;  %v605_v3 = vshll.u32 %v1162_v56, %v593_v23 }
 0x10f   :  { %1128 = vsinq.f32 %v355_v30  ;;  %v606_v61 = vshrl.u32 %v1163_v58, %v594_v28  ;;  %v598_v43 = vor.u32 %v597_v41, %v596_v53  ;;  %v602_v0 = vshll.u32 %v1161_v54, %v593_v23 }
 0x110   :  { %v766_v20 = vmul.f32 %v765_v39, %v763_v36  ;;  %v1458_v62 = vsub.s32 %v223_v38, %v226_v60  ;;  %v478_v50 = vand.u32 2139095040, %v1438_v29  ;;  %v601_v4 = vor.u32 %v600_v47, %v599_v59 }
 0x111   :  { %v607_v18 = vor.u32 %v606_v61, %v605_v3  ;;  %v609_v5 = vshrl.u32 %v1164_v1, %v594_v28  ;;  %v219_v6 = vadd.s32 %v1411_v57, %v1419_v63  ;;  %v604_v7 = vor.u32 %v603_v33, %v602_v0 }
 0x112   :  { %v767_v2 = vxor.u32 2147483648, %v766_v20  ;;  %v229_v40 = vsub.s32 0, %v1458_v62  ;;  %v608_v9 = vshll.u32 %v1163_v58, %v593_v23  ;;  %vm366_vm12 = vcmp.eq.s32.totalorder %v1443_v51, 2 }
 0x113   :  { %v249_v13 = vsub.s32 4, %v225_v37  ;;  %vm611_vm13 = vcmp.lt.s32.totalorder %v1451_v49, 1  ;;  %v1471_v14 = vshll.u32 %v587_v46, 8  ;;  %vm363_vm14 = vcmp.eq.s32.totalorder %v1443_v51, 0 }
 0x114   :  { %v768_v10 = vsel %vm685_vm5, %v767_v2, %v766_v20  ;;  %v1017_v63 = vmin.u32 %v229_v40, %v1458_v62  ;;  %v610_v11 = vor.u32 %v609_v5, %v608_v9  ;;  %vm614_vm15 = vcmp.lt.s32.totalorder %v1451_v49, 4 }
 0x115   :  { %v771_v57 = vsel %vm1397_vm7, %v1238_v16, %v768_v10  ;;  %vm362_vm1 = vcmp.lt.s32.totalorder %v1443_v51, 2  ;;  %v595_v17 = vshrl.u32 %v1159_v48, %v594_v28  ;;  %v619_v32 = vsel %vm611_vm13, %v598_v43, %v601_v4 }
 0x116   :  { %1130 = vcosq.f32 %v771_v57  ;;  %v620_v19 = vsel %vm614_vm15, %v607_v18, 920167782  ;;  %vm359_vm2 = vweird.f32 %v1235_v15  ;;  %vm1488_vm3 = vcmp.le.f32.partialorder %v163_v34, 0.7853982 }
 0x117   :  { %1132 = vsinq.f32 %v771_v57  ;;  %v231_v21 = vclz %v1017_v63  ;;  %vm613_vm4 = vcmp.lt.s32.totalorder %v1451_v49, 3  ;;  %v616_v55 = vsel %vm614_vm15, %v604_v7, 2102212464 }
 0x118   :  { %v250_v22 = vsel %vm165_vm11, %v249_v13, %v225_v37  ;;  %vm612_vm5 = vcmp.lt.s32.totalorder %v1451_v49, 2  ;;  %v621_v38 = vsel %vm613_vm4, %v604_v7, %v620_v19  ;;  %v623_v23 = vsel %vm611_vm13, %v601_v4, %v604_v7 }
 0x119   :  { %v1018_v25 = vadd.s32 4294967294, %v231_v21  ;;  %v615_v34 = vsel %vm611_vm13, %v595_v17, %v598_v43  ;;  %v622_v26 = vsel %vm612_vm5, %v619_v32, %v621_v38  ;;  %v624_v8 = vsel %vm614_vm15, %v610_v11, 1326507024 }
 0x11a   :  { %v617_v28 = vsel %vm613_vm4, %v601_v4, %v616_v55  ;;  %v625_v30 = vsel %vm613_vm4, %v607_v18, %v624_v8  ;;  %v1507_v44 = vmul.u32.u64.low %v1471_v14, %v622_v26  ;;  %v1508_v37 = vmul.u32.u64.high %v1471_v14, %v622_v26, %v1507_v44 }
 0x11b   :  { %v1127_v27 = vpop.eup %1126  ;;  %vm1019_vm6 = vcmp.lt.s32.totalorder %v1018_v25, 0  ;;  %v626_v36 = vsel %vm612_vm5, %v623_v23, %v625_v30  ;;  %v479_v39 = vshrl.u32 %v478_v50, 23  ;;  %v618_v61 = vsel %vm612_vm5, %v615_v34, %v617_v28 }
 0x11c   :  { %v1129_v46 = vpop.eup %1128  ;;  %v367_v41 = vxor.u32 2147483648, %v1127_v27  ;;  %v234_v60 = vsel %vm1019_vm6, 0, %v1018_v25  ;;  %v1514_v53 = vmul.u32.u64.low %v1471_v14, %v626_v36  ;;  %v1515_v33 = vmul.u32.u64.high %v1471_v14, %v626_v36, %v1514_v53 }
 0x11d   :  { %v364_v47 = vxor.u32 2147483648, %v1129_v46  ;;  %v235_v59 = vsub.s32 32, %v234_v60  ;;  %v239_v3 = vsub.s32 4294967266, %v234_v60  ;;  %v777_v0 = vand.u32 3, %v1445_v35  ;;  %v1079_v35 = vpop.f32.mrf.mxu1 }
 0x11e   :  { %v368_v20 = vsel %vm366_vm12, %v367_v41, %v1129_v46  ;;  %v637_v50 = vadd.s32 1, %v1508_v37  ;;  %v1028_v2 = vadd.s32 4294967169, %v479_v39  ;;  %v236_v18 = vshll.u32 %v1458_v62, %v234_v60 }
 0x11f   :  { %v365_v43 = vsel %vm363_vm14, %v1127_v27, %v364_v47  ;;  %v237_v5 = vshrl.u32 %v219_v6, %v235_v59  ;;  %v240_v40 = vadd.s32 127, %v239_v3  ;;  %v252_v49 = vsel %vm1488_vm3, 0, %v250_v22 }
 0x120   :  { %v369_v4 = vsel %vm362_vm1, %v365_v43, %v368_v20  ;;  %v634_v9 = vmul.u32 %v1471_v14, %v618_v61  ;;  %vm636_vm7 = vc.u32 %v1515_v33, %v1507_v44  ;;  %v485_v15 = vadd.s32 1, %v1028_v2 }
 0x121   :  { %v370_v7 = vsel %vm359_vm2, nan, %v369_v4  ;;  %v238_v51 = vor.u32 %v237_v5, %v236_v18  ;;  %v241_v62 = vshll.u32 %v240_v40, 23  ;;  %v638_v6 = vsel %vm636_vm7, %v637_v50, %v1508_v37 }
 0x122   :  { %996 = vst.msk [vmem:[%s1816_s3 + $0x8] sm:$0xff] %vm33_vm0, %v370_v7  ;;  %v639_v10 = vadd.s32 %v638_v6, %v634_v9  ;;  %v475_v13 = vand.u32 2147483647, %v1438_v29  ;;  %vm782_vm8 = vcmp.eq.s32.totalorder %v777_v0, 2  ;;  %vm486_vm9 = vcmp.gt.s32.totalorder %v485_v15, 0 }
 0x123   :  { %v1131_v57 = vpop.eup %1130  ;;  %v242_v14 = vor.u32 4788187, %v241_v62  ;;  %v1542_v63 = vadd.f32 %v1079_v35, %v1232_v12  ;;  %v256_v32 = vadd.s32 3, %v252_v49  ;;  %v487_v21 = vsel %vm486_vm9, %v485_v15, 0 }
 0x124   :  { %v1133_v11 = vpop.eup %1132  ;;  %v783_v17 = vxor.u32 2147483648, %v1131_v57  ;;  %v640_v19 = vadd.s32 536870912, %v639_v10  ;;  %v245_v38 = vcvt.s32.f32 %v238_v51  ;;  %v489_v23 = vand.u32 31, %v487_v21 }
 0x125   :  { %v780_v55 = vxor.u32 2147483648, %v1133_v11  ;;  %v243_v22 = vand.u32 2147483647, %v242_v14  ;;  %vm779_vm10 = vcmp.eq.s32.totalorder %v777_v0, 0  ;;  %v482_v26 = vand.u32 8388607, %v475_v13 }
 0x126   :  { %v784_v25 = vsel %vm782_vm8, %v783_v17, %v1133_v11  ;;  %v1544_v34 = vshrl.u32 %v640_v19, 30  ;;  %vm778_vm12 = vcmp.lt.s32.totalorder %v777_v0, 2  ;;  %v490_v28 = vsub.s32 32, %v489_v23 }
 0x127   :  { %v781_v8 = vsel %vm779_vm10, %v1131_v57, %v780_v55  ;;  %v246_v27 = vmul.f32 %v245_v38, %v243_v22  ;;  %vm775_vm13 = vweird.f32 %v1238_v16  ;;  %v1550_v36 = vand.u32 3, %v256_v32 }
 0x128   :  { %v785_v30 = vsel %vm778_vm12, %v781_v8, %v784_v25  ;;  %v642_v37 = vshll.u32 %v1544_v34, 30  ;;  %v493_v39 = vshrl.u32 %v1160_v52, %v490_v28  ;;  %v483_v60 = vor.u32 8388608, %v482_v26 }
 0x129   :  { %v786_v46 = vsel %vm775_vm13, nan, %v785_v30  ;;  %v247_v41 = vxor.u32 2147483648, %v246_v27  ;;  %v496_v53 = vshrl.u32 %v1161_v54, %v490_v28  ;;  %v894_v16 = vand.u32 2139095040, %v1542_v63 }
 0x12a   :  { %1000 = vst.msk [vmem:[%s1816_s3 + $0x28] sm:$0xff] %vm33_vm0, %v786_v46  ;;  %v1557_v47 = vsub.s32 %v639_v10, %v642_v37  ;;  %v488_v59 = vshrl.u32 %v487_v21, 5  ;;  %v492_v3 = vshll.u32 %v1159_v48, %v489_v23  ;;  %v499_v61 = vshrl.u32 %v1162_v56, %v490_v28 }
 0x12b   :  { %v248_v20 = vsel %vm165_vm11, %v247_v41, %v246_v27  ;;  %v495_v50 = vshll.u32 %v1160_v52, %v489_v23  ;;  %v498_v2 = vshll.u32 %v1161_v54, %v489_v23  ;;  %v501_v18 = vshll.u32 %v1162_v56, %v489_v23 }
 0x12c   :  { %v251_v43 = vsel %vm1488_vm3, %v1247_v24, %v248_v20  ;;  %v645_v0 = vsub.s32 0, %v1557_v47  ;;  %v494_v4 = vor.u32 %v493_v39, %v492_v3  ;;  %v502_v5 = vshrl.u32 %v1163_v58, %v490_v28 }
 0x12d   :  { %1134 = vcosq.f32 %v251_v43  ;;  %v497_v7 = vor.u32 %v496_v53, %v495_v50  ;;  %v500_v49 = vor.u32 %v499_v61, %v498_v2  ;;  %v504_v31 = vshll.u32 %v1163_v58, %v489_v23 }
 0x12e   :  { %1136 = vsinq.f32 %v251_v43  ;;  %v1033_v40 = vmin.u32 %v645_v0, %v1557_v47  ;;  %v503_v9 = vor.u32 %v502_v5, %v501_v18  ;;  %v505_v35 = vshrl.u32 %v1164_v1, %v490_v28 }
 0x12f   :  { %v523_v51 = vshll.u32 %v483_v60, 8  ;;  %v491_v6 = vshrl.u32 %v1159_v48, %v490_v28  ;;  %vm507_vm11 = vcmp.lt.s32.totalorder %v488_v59, 1  ;;  %v895_v15 = vshrl.u32 %v894_v16, 23 }
 0x130   :  { %v647_v62 = vclz %v1033_v40  ;;  %v506_v10 = vor.u32 %v505_v35, %v504_v31  ;;  %vm508_vm14 = vcmp.lt.s32.totalorder %v488_v59, 2  ;;  %vm509_vm15 = vcmp.lt.s32.totalorder %v488_v59, 3 }
 0x131   :  { %vm510_vm1 = vcmp.lt.s32.totalorder %v488_v59, 4  ;;  %v515_v11 = vsel %vm507_vm11, %v494_v4, %v497_v7  ;;  %v511_v32 = vsel %vm507_vm11, %v491_v6, %v494_v4  ;;  %v519_v21 = vsel %vm507_vm11, %v497_v7, %v500_v49 }
 0x132   :  { %v1034_v57 = vadd.s32 4294967294, %v647_v62  ;;  %v512_v14 = vsel %vm510_vm1, %v500_v49, 2102212464  ;;  %v516_v17 = vsel %vm510_vm1, %v503_v9, 920167782  ;;  %vm581_vm3 = vcmp.lt.s32.totalorder %v1254_v42, 0 }
 0x133   :  { %v517_v19 = vsel %vm509_vm15, %v500_v49, %v516_v17  ;;  %v520_v55 = vsel %vm510_vm1, %v506_v10, 1326507024  ;;  %v513_v22 = vsel %vm509_vm15, %v497_v7, %v512_v14  ;;  %v635_v28 = vadd.s32 %v1507_v44, %v1515_v33 }
 0x134   :  { %vm1035_vm2 = vcmp.lt.s32.totalorder %v1034_v57, 0  ;;  %v518_v38 = vsel %vm508_vm14, %v515_v11, %v517_v19  ;;  %v521_v23 = vsel %vm509_vm15, %v503_v9, %v520_v55  ;;  %v891_v39 = vand.u32 2147483647, %v1542_v63 }
 0x135   :  { %v650_v25 = vsel %vm1035_vm2, 0, %v1034_v57  ;;  %v522_v26 = vsel %vm508_vm14, %v519_v21, %v521_v23  ;;  %v1579_v8 = vmul.u32.u64.low %v523_v51, %v518_v38  ;;  %v1580_v27 = vmul.u32.u64.high %v523_v51, %v518_v38, %v1579_v8 }
 0x136   :  { %v651_v30 = vsub.s32 32, %v650_v25  ;;  %v655_v37 = vsub.s32 4294967266, %v650_v25  ;;  %v1586_v46 = vmul.u32.u64.low %v523_v51, %v522_v26  ;;  %v1587_v41 = vmul.u32.u64.high %v523_v51, %v522_v26, %v1586_v46 }
 0x137   :  { %v1044_v60 = vadd.s32 4294967169, %v895_v15  ;;  %v652_v53 = vshll.u32 %v1557_v47, %v650_v25  ;;  %v514_v3 = vsel %vm508_vm14, %v511_v32, %v513_v22  ;;  %vm258_vm4 = vcmp.lt.s32.totalorder %v1550_v36, 2  ;;  %v134_v15 = vpop.f32.mrf.mxu0 }
 0x138   :  { %v653_v16 = vshrl.u32 %v635_v28, %v651_v30  ;;  %v656_v20 = vadd.s32 127, %v655_v37  ;;  %v665_v61 = vsub.s32 4, %v1544_v34  ;;  %v533_v44 = vadd.s32 1, %v1580_v27 }
 0x139   :  { %v901_v33 = vadd.s32 1, %v1044_v60  ;;  %vm259_vm5 = vcmp.eq.s32.totalorder %v1550_v36, 0  ;;  %vm262_vm6 = vcmp.eq.s32.totalorder %v1550_v36, 2  ;;  %v530_v4 = vmul.u32 %v523_v51, %v514_v3 }
 0x13a   :  { %v1135_v43 = vpop.eup %1134  ;;  %v654_v0 = vor.u32 %v653_v16, %v652_v53  ;;  %v657_v50 = vshll.u32 %v656_v20, 23  ;;  %vm532_vm7 = vc.u32 %v1587_v41, %v1579_v8  ;;  %v898_v40 = vand.u32 8388607, %v891_v39 }
 0x13b   :  { %v1137_v2 = vpop.eup %1136  ;;  %v263_v47 = vxor.u32 2147483648, %v1135_v43  ;;  %vm902_vm8 = vcmp.gt.s32.totalorder %v901_v33, 0  ;;  %v534_v5 = vsel %vm532_vm7, %v533_v44, %v1580_v27  ;;  %v666_v49 = vsel %vm581_vm3, %v665_v61, %v1544_v34 }
 0x13c   :  { %v260_v59 = vxor.u32 2147483648, %v1137_v2  ;;  %v658_v18 = vor.u32 4788187, %v657_v50  ;;  %v535_v9 = vadd.s32 %v534_v5, %v530_v4  ;;  %v903_v31 = vsel %vm902_vm8, %v901_v33, 0 }
 0x13d   :  { %v264_v7 = vsel %vm262_vm6, %v263_v47, %v1137_v2  ;;  %v661_v62 = vcvt.s32.f32 %v654_v0  ;;  %v905_v6 = vand.u32 31, %v903_v31  ;;  %vm255_vm9 = vweird.f32 %v1247_v24 }
 0x13e   :  { %v261_v35 = vsel %vm259_vm5, %v1135_v43, %v260_v59  ;;  %v659_v51 = vand.u32 2147483647, %v658_v18  ;;  %vm1612_vm10 = vcmp.le.f32.partialorder %v579_v45, 0.7853982  ;;  %v536_v34 = vadd.s32 536870912, %v535_v9 }
 0x13f   :  { %v265_v10 = vsel %vm258_vm4, %v261_v35, %v264_v7  ;;  %v668_v17 = vsel %vm1612_vm10, 0, %v666_v49  ;;  %v906_v32 = vsub.s32 32, %v905_v6  ;;  %v899_v36 = vor.u32 8388608, %v898_v40 }
 0x140   :  { %v266_v14 = vsel %vm255_vm9, nan, %v265_v10  ;;  %v662_v11 = vmul.f32 %v661_v62, %v659_v51  ;;  %v1622_v24 = vshrl.u32 %v536_v34, 30  ;;  %v908_v45 = vshll.u32 %v1159_v48, %v905_v6 }
 0x141   :  { %995 = vst.msk [vmem:[%s1816_s3] sm:$0xff] %vm33_vm0, %v266_v14  ;;  %v1626_v19 = vadd.f32 %v1232_v12, %v134_v15  ;;  %v909_v55 = vshrl.u32 %v1160_v52, %v906_v32  ;;  %v911_v22 = vshll.u32 %v1160_v52, %v905_v6  ;;  %v912_v38 = vshrl.u32 %v1161_v54, %v906_v32 }
 0x142   :  { %v663_v21 = vxor.u32 2147483648, %v662_v11  ;;  %v538_v23 = vshll.u32 %v1622_v24, 30  ;;  %v914_v25 = vshll.u32 %v1161_v54, %v905_v6  ;;  %v915_v26 = vshrl.u32 %v1162_v56, %v906_v32 }
 0x143   :  { %v918_v27 = vshrl.u32 %v1163_v58, %v906_v32  ;;  %v904_v12 = vshrl.u32 %v903_v31, 5  ;;  %v910_v30 = vor.u32 %v909_v55, %v908_v45  ;;  %v917_v37 = vshll.u32 %v1162_v56, %v905_v6 }
 0x144   :  { %v664_v28 = vsel %vm581_vm3, %v663_v21, %v662_v11  ;;  %v1641_v60 = vsub.s32 %v535_v9, %v538_v23  ;;  %v913_v53 = vor.u32 %v912_v38, %v911_v22  ;;  %v916_v16 = vor.u32 %v915_v26, %v914_v25 }
 0x145   :  { %v667_v46 = vsel %vm1612_vm10, %v1254_v42, %v664_v28  ;;  %v919_v20 = vor.u32 %v918_v27, %v917_v37  ;;  %v920_v3 = vshll.u32 %v1163_v58, %v905_v6  ;;  %v921_v61 = vshrl.u32 %v1164_v1, %v906_v32 }
 0x146   :  { %1138 = vcosq.f32 %v667_v46  ;;  %v541_v44 = vsub.s32 0, %v1641_v60  ;;  %v672_v33 = vadd.s32 3, %v668_v17  ;;  %vm926_vm12 = vcmp.lt.s32.totalorder %v904_v12, 4 }
 0x147   :  { %1140 = vsinq.f32 %v667_v46  ;;  %v922_v43 = vor.u32 %v921_v61, %v920_v3  ;;  %v374_v0 = vand.u32 2139095040, %v1626_v19  ;;  %v907_v2 = vshrl.u32 %v1159_v48, %v906_v32 }
 0x148   :  { %v1029_v50 = vmin.u32 %v541_v44, %v1641_v60  ;;  %vm923_vm13 = vcmp.lt.s32.totalorder %v904_v12, 1  ;;  %v928_v47 = vsel %vm926_vm12, %v916_v16, 2102212464  ;;  %vm924_vm11 = vcmp.lt.s32.totalorder %v904_v12, 2 }
 0x149   :  { %v931_v4 = vsel %vm923_vm13, %v910_v30, %v913_v53  ;;  %v932_v59 = vsel %vm926_vm12, %v919_v20, 920167782  ;;  %v939_v18 = vshll.u32 %v899_v36, 8  ;;  %vm925_vm14 = vcmp.lt.s32.totalorder %v904_v12, 3 }
 0x14a   :  { %v543_v5 = vclz %v1029_v50  ;;  %v927_v40 = vsel %vm923_vm13, %v907_v2, %v910_v30  ;;  %v935_v7 = vsel %vm923_vm13, %v913_v53, %v916_v16  ;;  %v929_v49 = vsel %vm925_vm14, %v913_v53, %v928_v47  ;;  %v154_v30 = vpop.f32.mrf.mxu1 }
 0x14b   :  { %v933_v9 = vsel %vm925_vm14, %v916_v16, %v932_v59  ;;  %v936_v31 = vsel %vm926_vm12, %v922_v43, 1326507024  ;;  %v375_v35 = vshrl.u32 %v374_v0, 23  ;;  %v673_v51 = vand.u32 3, %v672_v33  ;;  %v1158_v33 = vld [vmem:[%s1815_s2] ss:$0 sm:$0xff] }
 0x14c   :  { %v1030_v62 = vadd.s32 4294967294, %v543_v5  ;;  %v934_v6 = vsel %vm924_vm11, %v931_v4, %v933_v9  ;;  %v937_v15 = vsel %vm925_vm14, %v919_v20, %v936_v31  ;;  %v930_v11 = vsel %vm924_vm11, %v927_v40, %v929_v49 }
 0x14d   :  { %v938_v10 = vsel %vm924_vm11, %v935_v7, %v937_v15  ;;  %v1654_v57 = vmul.u32.u64.low %v939_v18, %v934_v6  ;;  %v1655_v34 = vmul.u32.u64.high %v939_v18, %v934_v6, %v1654_v57  ;;  %v1024_v14 = vadd.s32 4294967169, %v375_v35 }
 0x14e   :  { %vm1031_vm15 = vcmp.lt.s32.totalorder %v1030_v62, 0  ;;  %v1659_v17 = vmul.u32.u64.low %v939_v18, %v938_v10  ;;  %v1660_v32 = vmul.u32.u64.high %v939_v18, %v938_v10, %v1659_v17  ;;  %v371_v45 = vand.u32 2147483647, %v1626_v19 }
 0x14f   :  { %v546_v36 = vsel %vm1031_vm15, 0, %v1030_v62  ;;  %v381_v21 = vadd.s32 1, %v1024_v14  ;;  %vm671_vm1 = vweird.f32 %v1254_v42  ;;  %v531_v55 = vadd.s32 %v1579_v8, %v1587_v41 }
 0x150   :  { %v547_v22 = vsub.s32 32, %v546_v36  ;;  %v551_v38 = vsub.s32 4294967266, %v546_v36  ;;  %vm678_vm2 = vcmp.eq.s32.totalorder %v673_v51, 2  ;;  %v946_v23 = vmul.u32 %v939_v18, %v930_v11 }
 0x151   :  { %v949_v25 = vadd.s32 1, %v1655_v34  ;;  %vm382_vm3 = vcmp.gt.s32.totalorder %v381_v21, 0  ;;  %v548_v27 = vshll.u32 %v1641_v60, %v546_v36  ;;  %vm948_vm4 = vc.u32 %v1660_v32, %v1654_v57 }
 0x152   :  { %v549_v28 = vshrl.u32 %v531_v55, %v547_v22  ;;  %v552_v12 = vadd.s32 127, %v551_v38  ;;  %v378_v41 = vand.u32 8388607, %v371_v45  ;;  %v383_v53 = vsel %vm382_vm3, %v381_v21, 0 }
 0x153   :  { %v1139_v26 = vpop.eup %1138  ;;  %v950_v8 = vsel %vm948_vm4, %v949_v25, %v1655_v34  ;;  %vm675_vm5 = vcmp.eq.s32.totalorder %v673_v51, 0  ;;  %vm477_vm6 = vcmp.lt.s32.totalorder %v1438_v29, 0  ;;  %v385_v44 = vand.u32 31, %v383_v53 }
 0x154   :  { %v1141_v37 = vpop.eup %1140  ;;  %v679_v46 = vxor.u32 2147483648, %v1139_v26  ;;  %v550_v20 = vor.u32 %v549_v28, %v548_v27  ;;  %v553_v3 = vshll.u32 %v552_v12, 23  ;;  %v951_v61 = vadd.s32 %v950_v8, %v946_v23 }
 0x155   :  { %v676_v16 = vxor.u32 2147483648, %v1141_v37  ;;  %v1678_v43 = vadd.f32 %v1158_v33, %v154_v30  ;;  %vm674_vm7 = vcmp.lt.s32.totalorder %v673_v51, 2  ;;  %vm1682_vm8 = vcmp.le.f32.partialorder %v475_v13, 0.7853982 }
 0x156   :  { %v680_v60 = vsel %vm678_vm2, %v679_v46, %v1141_v37  ;;  %v554_v2 = vor.u32 4788187, %v553_v3  ;;  %v952_v47 = vadd.s32 536870912, %v951_v61  ;;  %v561_v59 = vsub.s32 4, %v1622_v24 }
 0x157   :  { %v677_v0 = vsel %vm675_vm5, %v1139_v26, %v676_v16  ;;  %v379_v18 = vor.u32 8388608, %v378_v41  ;;  %v386_v5 = vsub.s32 32, %v385_v44  ;;  %v557_v49 = vcvt.s32.f32 %v550_v20 }
 0x158   :  { %v681_v4 = vsel %vm674_vm7, %v677_v0, %v680_v60  ;;  %v555_v7 = vand.u32 2147483647, %v554_v2  ;;  %v1689_v9 = vshrl.u32 %v952_v47, 30  ;;  %v790_v51 = vand.u32 2139095040, %v1678_v43 }
 0x159   :  { %v682_v40 = vsel %vm671_vm1, nan, %v681_v4  ;;  %v389_v13 = vshrl.u32 %v1160_v52, %v386_v5  ;;  %v392_v31 = vshrl.u32 %v1161_v54, %v386_v5  ;;  %v395_v35 = vshrl.u32 %v1162_v56, %v386_v5 }
 0x15a   :  { %999 = vst.msk [vmem:[%s1816_s3 + $0x20] sm:$0xff] %vm33_vm0, %v682_v40  ;;  %v558_v62 = vmul.f32 %v557_v49, %v555_v7  ;;  %v954_v42 = vshll.u32 %v1689_v9, 30  ;;  %v388_v6 = vshll.u32 %v1159_v48, %v385_v44  ;;  %v391_v15 = vshll.u32 %v1160_v52, %v385_v44 }
 0x15b   :  { %v384_v10 = vshrl.u32 %v383_v53, 5  ;;  %v394_v34 = vshll.u32 %v1161_v54, %v385_v44  ;;  %v397_v14 = vshll.u32 %v1162_v56, %v385_v44  ;;  %v398_v11 = vshrl.u32 %v1163_v58, %v386_v5 }
 0x15c   :  { %v559_v17 = vxor.u32 2147483648, %v558_v62  ;;  %v955_v36 = vsub.s32 %v951_v61, %v954_v42  ;;  %v390_v21 = vor.u32 %v389_v13, %v388_v6  ;;  %v393_v55 = vor.u32 %v392_v31, %v391_v15 }
 0x15d   :  { %v396_v22 = vor.u32 %v395_v35, %v394_v34  ;;  %v399_v38 = vor.u32 %v398_v11, %v397_v14  ;;  %v400_v23 = vshll.u32 %v1163_v58, %v385_v44  ;;  %v401_v25 = vshrl.u32 %v1164_v1, %v386_v5 }
 0x15e   :  { %v560_v26 = vsel %vm477_vm6, %v559_v17, %v558_v62  ;;  %v562_v27 = vsel %vm477_vm6, %v561_v59, %v1622_v24  ;;  %v957_v28 = vsub.s32 0, %v955_v36  ;;  %v419_v12 = vshll.u32 %v379_v18, 8 }
 0x15f   :  { %v563_v30 = vsel %vm1682_vm8, %v1438_v29, %v560_v26  ;;  %v387_v37 = vshrl.u32 %v1159_v48, %v386_v5  ;;  %v402_v46 = vor.u32 %v401_v25, %v400_v23  ;;  %v791_v8 = vshrl.u32 %v790_v51, 23 }
 0x160   :  { %1142 = vcosq.f32 %v563_v30  ;;  %v1045_v41 = vmin.u32 %v957_v28, %v955_v36  ;;  %vm403_vm9 = vcmp.lt.s32.totalorder %v384_v10, 1  ;;  %vm406_vm10 = vcmp.lt.s32.totalorder %v384_v10, 4 }
 0x161   :  { %1144 = vsinq.f32 %v563_v30  ;;  %v408_v53 = vsel %vm406_vm10, %v396_v22, 2102212464  ;;  %v411_v16 = vsel %vm403_vm9, %v390_v21, %v393_v55  ;;  %v412_v20 = vsel %vm406_vm10, %v399_v38, 920167782 }
 0x162   :  { %v959_v3 = vclz %v1045_v41  ;;  %vm404_vm12 = vcmp.lt.s32.totalorder %v384_v10, 2  ;;  %vm405_vm13 = vcmp.lt.s32.totalorder %v384_v10, 3  ;;  %v407_v24 = vsel %vm403_vm9, %v387_v37, %v390_v21 }
 0x163   :  { %v409_v61 = vsel %vm405_vm13, %v393_v55, %v408_v53  ;;  %v413_v60 = vsel %vm405_vm13, %v396_v22, %v412_v20  ;;  %v415_v44 = vsel %vm403_vm9, %v393_v55, %v396_v22  ;;  %v416_v33 = vsel %vm406_vm10, %v402_v46, 1326507024 }
 0x164   :  { %v564_v0 = vsel %vm1682_vm8, 0, %v562_v27  ;;  %v1046_v2 = vadd.s32 4294967294, %v959_v3  ;;  %v414_v47 = vsel %vm404_vm12, %v411_v16, %v413_v60  ;;  %v417_v4 = vsel %vm405_vm13, %v399_v38, %v416_v33 }
 0x165   :  { %v410_v59 = vsel %vm404_vm12, %v407_v24, %v409_v61  ;;  %v418_v18 = vsel %vm404_vm12, %v415_v44, %v417_v4  ;;  %v1718_v5 = vmul.u32.u64.low %v419_v12, %v414_v47  ;;  %v1719_v40 = vmul.u32.u64.high %v419_v12, %v414_v47, %v1718_v5 }
 0x166   :  { %vm1047_vm11 = vcmp.lt.s32.totalorder %v1046_v2, 0  ;;  %v1722_v7 = vmul.u32.u64.low %v419_v12, %v418_v18  ;;  %v1723_v49 = vmul.u32.u64.high %v419_v12, %v418_v18, %v1722_v7  ;;  %v1040_v13 = vadd.s32 4294967169, %v791_v8 }
 0x167   :  { %v568_v31 = vadd.s32 3, %v564_v0  ;;  %v962_v35 = vsel %vm1047_vm11, 0, %v1046_v2  ;;  %v947_v50 = vadd.s32 %v1654_v57, %v1660_v32  ;;  %v426_v6 = vmul.u32 %v419_v12, %v410_v59 }
 0x168   :  { %v963_v51 = vsub.s32 32, %v962_v35  ;;  %v967_v62 = vsub.s32 4294967266, %v962_v35  ;;  %v797_v42 = vadd.s32 1, %v1040_v13  ;;  %v429_v15 = vadd.s32 1, %v1719_v40 }
 0x169   :  { %v787_v10 = vand.u32 2147483647, %v1678_v43  ;;  %v964_v34 = vshll.u32 %v955_v36, %v962_v35  ;;  %vm428_vm14 = vc.u32 %v1723_v49, %v1718_v5  ;;  %v569_v17 = vand.u32 3, %v568_v31 }
 0x16a   :  { %v965_v14 = vshrl.u32 %v947_v50, %v963_v51  ;;  %v968_v11 = vadd.s32 127, %v967_v62  ;;  %v430_v21 = vsel %vm428_vm14, %v429_v15, %v1719_v40  ;;  %vm798_vm15 = vcmp.gt.s32.totalorder %v797_v42, 0 }
 0x16b   :  { %v431_v32 = vadd.s32 %v430_v21, %v426_v6  ;;  %v799_v22 = vsel %vm798_vm15, %v797_v42, 0  ;;  %vm567_vm1 = vweird.f32 %v1438_v29  ;;  %vm893_vm2 = vcmp.lt.s32.totalorder %v1542_v63, 0 }
 0x16c   :  { %v966_v55 = vor.u32 %v965_v14, %v964_v34  ;;  %v969_v57 = vshll.u32 %v968_v11, 23  ;;  %v977_v36 = vsub.s32 4, %v1689_v9  ;;  %v801_v23 = vand.u32 31, %v799_v22 }
 0x16d   :  { %v1143_v38 = vpop.eup %1142  ;;  %vm1737_vm3 = vcmp.le.f32.partialorder %v891_v39, 0.7853982  ;;  %v432_v12 = vadd.s32 536870912, %v431_v32  ;;  %v794_v30 = vand.u32 8388607, %v787_v10  ;;  %vm571_vm4 = vcmp.eq.s32.totalorder %v569_v17, 0 }
 0x16e   :  { %v1145_v25 = vpop.eup %1144  ;;  %v575_v26 = vxor.u32 2147483648, %v1143_v38  ;;  %v970_v28 = vor.u32 4788187, %v969_v57  ;;  %vm574_vm5 = vcmp.eq.s32.totalorder %v569_v17, 2  ;;  %v802_v46 = vsub.s32 32, %v801_v23 }
 0x16f   :  { %v572_v37 = vxor.u32 2147483648, %v1145_v25  ;;  %v973_v53 = vcvt.s32.f32 %v966_v55  ;;  %v1743_v16 = vshrl.u32 %v432_v12, 30  ;;  %vm570_vm6 = vcmp.lt.s32.totalorder %v569_v17, 2 }
 0x170   :  { %v576_v8 = vsel %vm574_vm5, %v575_v26, %v1145_v25  ;;  %v971_v41 = vand.u32 2147483647, %v970_v28  ;;  %v978_v39 = vsel %vm893_vm2, %v977_v36, %v1689_v9  ;;  %v805_v3 = vshrl.u32 %v1160_v52, %v802_v46 }
 0x171   :  { %v573_v20 = vsel %vm571_vm4, %v1143_v38, %v572_v37  ;;  %v434_v60 = vshll.u32 %v1743_v16, 30  ;;  %v795_v44 = vor.u32 8388608, %v794_v30  ;;  %v804_v0 = vshll.u32 %v1159_v48, %v801_v23 }
 0x172   :  { %v577_v24 = vsel %vm570_vm6, %v573_v20, %v576_v8  ;;  %v974_v61 = vmul.f32 %v973_v53, %v971_v41  ;;  %v808_v2 = vshrl.u32 %v1161_v54, %v802_v46  ;;  %v811_v47 = vshrl.u32 %v1162_v56, %v802_v46 }
 0x173   :  { %v578_v33 = vsel %vm567_vm1, nan, %v577_v24  ;;  %v435_v4 = vsub.s32 %v431_v32, %v434_v60  ;;  %v800_v59 = vshrl.u32 %v799_v22, 5  ;;  %v807_v18 = vshll.u32 %v1160_v52, %v801_v23 }
 0x174   :  { %998 = vst.msk [vmem:[%s1816_s3 + $0x18] sm:$0xff] %vm33_vm0, %v578_v33  ;;  %v975_v9 = vxor.u32 2147483648, %v974_v61  ;;  %v806_v40 = vor.u32 %v805_v3, %v804_v0  ;;  %v810_v29 = vshll.u32 %v1161_v54, %v801_v23  ;;  %v813_v7 = vshll.u32 %v1162_v56, %v801_v23 }
 0x175   :  { %v814_v13 = vshrl.u32 %v1163_v58, %v802_v46  ;;  %v437_v35 = vsub.s32 0, %v435_v4  ;;  %v816_v50 = vshll.u32 %v1163_v58, %v801_v23  ;;  %v817_v51 = vshrl.u32 %v1164_v1, %v802_v46 }
 0x176   :  { %v976_v31 = vsel %vm893_vm2, %v975_v9, %v974_v61  ;;  %v809_v52 = vor.u32 %v808_v2, %v807_v18  ;;  %v812_v42 = vor.u32 %v811_v47, %v810_v29  ;;  %v980_v15 = vsel %vm1737_vm3, 0, %v978_v39 }
 0x177   :  { %v979_v62 = vsel %vm1737_vm3, %v1542_v63, %v976_v31  ;;  %v815_v6 = vor.u32 %v814_v13, %v813_v7  ;;  %v1025_v54 = vmin.u32 %v437_v35, %v435_v4  ;;  %v818_v56 = vor.u32 %v817_v51, %v816_v50 }
 0x178   :  { %1146 = vcosq.f32 %v979_v62  ;;  %v803_v34 = vshrl.u32 %v1159_v48, %v802_v46  ;;  %v835_v14 = vshll.u32 %v795_v44, 8  ;;  %vm819_vm7 = vcmp.lt.s32.totalorder %v800_v59, 1 }
 0x179   :  { %1148 = vsinq.f32 %v979_v62  ;;  %v439_v58 = vclz %v1025_v54  ;;  %vm821_vm8 = vcmp.lt.s32.totalorder %v800_v59, 3  ;;  %vm822_vm9 = vcmp.lt.s32.totalorder %v800_v59, 4 }
 0x17a   :  { %v824_v1 = vsel %vm822_vm9, %v812_v42, 2102212464  ;;  %v827_v11 = vsel %vm819_vm7, %v806_v40, %v809_v52  ;;  %v828_v17 = vsel %vm822_vm9, %v815_v6, 920167782  ;;  %v831_v21 = vsel %vm819_vm7, %v809_v52, %v812_v42 }
 0x17b   :  { %v1026_v55 = vadd.s32 4294967294, %v439_v58  ;;  %vm820_vm10 = vcmp.lt.s32.totalorder %v800_v59, 2  ;;  %v829_v57 = vsel %vm821_vm8, %v812_v42, %v828_v17  ;;  %v832_v32 = vsel %vm822_vm9, %v818_v56, 1326507024 }
 0x17c   :  { %v823_v22 = vsel %vm819_vm7, %v803_v34, %v806_v40  ;;  %v825_v38 = vsel %vm821_vm8, %v809_v52, %v824_v1  ;;  %v830_v36 = vsel %vm820_vm10, %v827_v11, %v829_v57  ;;  %v833_v23 = vsel %vm821_vm8, %v815_v6, %v832_v32 }
 0x17d   :  { %vm1027_vm12 = vcmp.lt.s32.totalorder %v1026_v55, 0  ;;  %v834_v48 = vsel %vm820_vm10, %v831_v21, %v833_v23  ;;  %v1775_v25 = vmul.u32.u64.low %v835_v14, %v830_v36  ;;  %v1776_v26 = vmul.u32.u64.high %v835_v14, %v830_v36, %v1775_v25 }
 0x17e   :  { %v984_v27 = vadd.s32 3, %v980_v15  ;;  %v442_v28 = vsel %vm1027_vm12, 0, %v1026_v55  ;;  %v1778_v12 = vmul.u32.u64.low %v835_v14, %v834_v48  ;;  %v1779_v30 = vmul.u32.u64.high %v835_v14, %v834_v48, %v1778_v12 }
 0x17f   :  { %v427_v37 = vadd.s32 %v1718_v5, %v1723_v49  ;;  %v443_v46 = vsub.s32 32, %v442_v28  ;;  %v447_v8 = vsub.s32 4294967266, %v442_v28  ;;  %v826_v41 = vsel %vm820_vm10, %v823_v22, %v825_v38 }
 0x180   :  { %v444_v53 = vshll.u32 %v435_v4, %v442_v28  ;;  %v845_v3 = vadd.s32 1, %v1776_v26  ;;  %v985_v24 = vand.u32 3, %v984_v27  ;;  %v842_v61 = vmul.u32 %v835_v14, %v826_v41 }
 0x181   :  { %v445_v20 = vshrl.u32 %v427_v37, %v443_v46  ;;  %v448_v39 = vadd.s32 127, %v447_v8  ;;  %vm844_vm13 = vc.u32 %v1779_v30, %v1775_v25  ;;  %vm983_vm1 = vweird.f32 %v1542_v63 }
 0x182   :  { %v846_v33 = vsel %vm844_vm13, %v845_v3, %v1776_v26  ;;  %vm990_vm11 = vcmp.eq.s32.totalorder %v985_v24, 2  ;;  %vm987_vm14 = vcmp.eq.s32.totalorder %v985_v24, 0  ;;  %vm986_vm15 = vcmp.lt.s32.totalorder %v985_v24, 2 }
 0x183   :  { %v446_v60 = vor.u32 %v445_v20, %v444_v53  ;;  %v449_v44 = vshll.u32 %v448_v39, 23  ;;  %v847_v2 = vadd.s32 %v846_v33, %v842_v61  ;;  %vm373_vm2 = vcmp.lt.s32.totalorder %v1626_v19, 0 }
 0x184   :  { %v457_v62 = vsub.s32 4, %v1743_v16  ;;  %vm372_vm3 = vcmp.le.f32.partialorder %v371_v45, 0.7853982  ;;  %v843_v11 = vadd.s32 %v1775_v25, %v1779_v30  ;;  %vm463_vm8 = vweird.f32 %v1626_v19 }
 0x185   :  { %v1147_v0 = vpop.eup %1146  ;;  %v450_v47 = vor.u32 4788187, %v449_v44  ;;  %v848_v4 = vadd.s32 536870912, %v847_v2  ;;  %v453_v40 = vcvt.s32.f32 %v446_v60  ;;  %vm789_vm9 = vcmp.lt.s32.totalorder %v1678_v43, 0 }
 0x186   :  { %v1149_v5 = vpop.eup %1148  ;;  %v991_v49 = vxor.u32 2147483648, %v1147_v0  ;;  %v458_v54 = vsel %vm373_vm2, %v457_v62, %v1743_v16  ;;  %vm788_vm10 = vcmp.le.f32.partialorder %v787_v10, 0.7853982 }
 0x187   :  { %v988_v9 = vxor.u32 2147483648, %v1149_v5  ;;  %v451_v18 = vand.u32 2147483647, %v450_v47  ;;  %v849_v7 = vshrl.u32 %v848_v4, 30  ;;  %v460_v34 = vsel %vm372_vm3, 0, %v458_v54 }
 0x188   :  { %v992_v59 = vsel %vm990_vm11, %v991_v49, %v1149_v5  ;;  %v464_v58 = vadd.s32 3, %v460_v34 }
 0x189   :  { %v989_v29 = vsel %vm987_vm14, %v1147_v0, %v988_v9  ;;  %v454_v31 = vmul.f32 %v453_v40, %v451_v18  ;;  %v850_v50 = vshll.u32 %v849_v7, 30  ;;  %v873_v41 = vsub.s32 4, %v849_v7 }
 0x18a   :  { %v993_v13 = vsel %vm986_vm15, %v989_v29, %v992_v59  ;;  %v465_v45 = vand.u32 3, %v464_v58  ;;  %vm879_vm14 = vweird.f32 %v1678_v43 }
 0x18b   :  { %v994_v35 = vsel %vm983_vm1, nan, %v993_v13  ;;  %v455_v51 = vxor.u32 2147483648, %v454_v31  ;;  %v851_v52 = vsub.s32 %v847_v2, %v850_v50 }
 0x18c   :  { %1002 = vst.msk [vmem:[%s1816_s3 + $0x38] sm:$0xff] %vm33_vm0, %v994_v35  ;;  %vm470_vm5 = vcmp.eq.s32.totalorder %v465_v45, 2  ;;  %vm467_vm6 = vcmp.eq.s32.totalorder %v465_v45, 0  ;;  %vm466_vm7 = vcmp.lt.s32.totalorder %v465_v45, 2 }
 0x18d   :  { %v456_v42 = vsel %vm373_vm2, %v455_v51, %v454_v31  ;;  %v853_v6 = vsub.s32 0, %v851_v52 }
 0x18e   :  { %v459_v63 = vsel %vm372_vm3, %v1626_v19, %v456_v42  ;;  %v874_v19 = vsel %vm789_vm9, %v873_v41, %v849_v7 }
 0x18f   :  { %1150 = vcosq.f32 %v459_v63  ;;  %v1041_v56 = vmin.u32 %v853_v6, %v851_v52  ;;  %v876_v39 = vsel %vm788_vm10, 0, %v874_v19 }
 0x190   :  { %1152 = vsinq.f32 %v459_v63  ;;  %v880_v3 = vadd.s32 3, %v876_v39 }
 0x191   :  { %v855_v15 = vclz %v1041_v56 }
 0x192   :  { %v881_v24 = vand.u32 3, %v880_v3 }
 0x193   :  { %v1042_v14 = vadd.s32 4294967294, %v855_v15 }
 0x194   :  { %vm886_vm12 = vcmp.eq.s32.totalorder %v881_v24, 2  ;;  %vm883_vm13 = vcmp.eq.s32.totalorder %v881_v24, 0  ;;  %vm882_vm11 = vcmp.lt.s32.totalorder %v881_v24, 2 }
 0x195   :  { %vm1043_vm4 = vcmp.lt.s32.totalorder %v1042_v14, 0 }
 0x196   :  { %v858_v1 = vsel %vm1043_vm4, 0, %v1042_v14 }
 0x197   :  { %v859_v17 = vsub.s32 32, %v858_v1  ;;  %v863_v21 = vsub.s32 4294967266, %v858_v1  ;;  %v860_v55 = vshll.u32 %v851_v52, %v858_v1 }
 0x199   :  { %v861_v57 = vshrl.u32 %v843_v11, %v859_v17  ;;  %v864_v32 = vadd.s32 127, %v863_v21 }
 0x19b   :  { %v862_v38 = vor.u32 %v861_v57, %v860_v55  ;;  %v865_v36 = vshll.u32 %v864_v32, 23 }
 0x19c   :  { %v1151_v22 = vpop.eup %1150 }
 0x19d   :  { %v1153_v16 = vpop.eup %1152  ;;  %v471_v23 = vxor.u32 2147483648, %v1151_v22  ;;  %v866_v26 = vor.u32 4788187, %v865_v36  ;;  %v869_v25 = vcvt.s32.f32 %v862_v38 }
 0x19e   :  { %v468_v48 = vxor.u32 2147483648, %v1153_v16 }
 0x19f   :  { %v472_v27 = vsel %vm470_vm5, %v471_v23, %v1153_v16  ;;  %v867_v12 = vand.u32 2147483647, %v866_v26 }
 0x1a0   :  { %v469_v28 = vsel %vm467_vm6, %v1151_v22, %v468_v48 }
 0x1a1   :  { %v473_v30 = vsel %vm466_vm7, %v469_v28, %v472_v27  ;;  %v870_v46 = vmul.f32 %v869_v25, %v867_v12 }
 0x1a2   :  { %v474_v37 = vsel %vm463_vm8, nan, %v473_v30 }
 0x1a3   :  { %997 = vst.msk [vmem:[%s1816_s3 + $0x10] sm:$0xff] %vm33_vm0, %v474_v37  ;;  %v871_v8 = vxor.u32 2147483648, %v870_v46 }
 0x1a5   :  { %v872_v53 = vsel %vm789_vm9, %v871_v8, %v870_v46 }
 0x1a6   :  { %v875_v20 = vsel %vm788_vm10, %v1678_v43, %v872_v53 }
 0x1a7   :  { %1154 = vcosq.f32 %v875_v20 }
 0x1a8   :  { %1156 = vsinq.f32 %v875_v20 }
 0x1b4   :  { %v1155_v61 = vpop.eup %1154 }
 0x1b5   :  { %v1157_v60 = vpop.eup %1156  ;;  %v887_v44 = vxor.u32 2147483648, %v1155_v61 }
 0x1b6   :  { %v884_v33 = vxor.u32 2147483648, %v1157_v60 }
 0x1b7   :  { %v888_v0 = vsel %vm886_vm12, %v887_v44, %v1157_v60 }
 0x1b8   :  { %v885_v2 = vsel %vm883_vm13, %v1155_v61, %v884_v33 }
 0x1b9   :  { %v889_v10 = vsel %vm882_vm11, %v885_v2, %v888_v0 }
 0x1ba   :  { %v890_v5 = vsel %vm879_vm14, nan, %v889_v10 }
 0x1bb   :  { %1001 = vst.msk [vmem:[%s1816_s3 + $0x30] sm:$0xff] %vm33_vm0, %v890_v5 }

</bundles_post_ra>
